<compile_context>
chip_gen: v7x
topology: tpu7x:2x2x1
jax: 0.10.0
libtpu: 0.0.40
codegen_flags: <defaults>
</compile_context>

<pallas_src>
import math

import jax
import jax.numpy as jnp
from jax.experimental import pallas as pl
from jax.experimental.pallas import tpu as pltpu


# --------------------------------- kernel ----------------------------------

def actor_kernel(x_ref, w1_ref, b1_ref, w2_ref, b2_ref, out_ref):
    """(tb, K) block -> (tb, N) block, f32: two MXU matmuls + VPU/EUP elementwise."""
    x = x_ref[...]
    h = jnp.dot(x, w1_ref[...], preferred_element_type=jnp.float32) + b1_ref[...]
    h = jnp.where(h > 0, h, 0.01 * h)                     # LeakyReLU(0.01)
    p = jnp.dot(h, w2_ref[...], preferred_element_type=jnp.float32) + b2_ref[...]
    out_ref[...] = jnp.tanh(p)


# ----------------------------- pallas launcher ------------------------------

def _actor_pallas(xp, w1, b1, w2, b2, *, batch_tile=1024):
    """xp: [R, K], w1: [K, H], b1: [1, H], w2: [H, N], b2: [1, N] -> [R, N] f32."""
    R, K = xp.shape
    H = w1.shape[1]
    N = w2.shape[1]

    if R <= batch_tile:
        # Small problem: one grid-less call, every operand a whole-array VMEM block.
        vmem = pl.BlockSpec(memory_space=pltpu.MemorySpace.VMEM)
        return pl.pallas_call(
            actor_kernel,
            out_shape=jax.ShapeDtypeStruct((R, N), jnp.float32),
            in_specs=[vmem] * 5,
            out_specs=vmem,
        )(xp, w1, b1, w2, b2)

    # Large batch: tile rows; weights stay resident (constant block index).
    tb = max(8, (batch_tile // 8) * 8)        # sublane-aligned tile
    nb = pl.cdiv(R, tb)                       # no jnp.pad: Pallas masks the edge block
    return pl.pallas_call(
        actor_kernel,
        out_shape=jax.ShapeDtypeStruct((R, N), jnp.float32),
        grid=(nb,),
        in_specs=[
            pl.BlockSpec((tb, K), lambda i: (i, 0)),
            pl.BlockSpec((K, H), lambda i: (0, 0)),   # constant index map ->
            pl.BlockSpec((1, H), lambda i: (0, 0)),   # block not re-fetched per step
            pl.BlockSpec((H, N), lambda i: (0, 0)),
            pl.BlockSpec((1, N), lambda i: (0, 0)),
        ],
        out_specs=pl.BlockSpec((tb, N), lambda i: (i, 0)),
        compiler_params=pltpu.CompilerParams(
            dimension_semantics=("parallel",)),
    )(xp, w1, b1, w2, b2)


# ------------------------- parameter preparation ----------------------------

def init_params(key, n_state, n_action, n_hidden):
    """Deterministic init matching actor_agent.__init__ + reset_parameters()."""
    k1, k2, k3, k4 = jax.random.split(key, 4)
    gain_lrelu = math.sqrt(2.0 / (1.0 + 0.01 ** 2))   # calculate_gain('leaky_relu')
    gain_tanh = 5.0 / 3.0                             # calculate_gain('tanh')
    bound1 = 1.0 / math.sqrt(n_state)
    w1 = jax.random.uniform(k1, (n_hidden, n_state), jnp.float32,
                            -bound1, bound1) * gain_lrelu
    b1 = jax.random.uniform(k2, (n_hidden,), jnp.float32, -bound1, bound1)
    bound2 = 1.0 / math.sqrt(n_hidden)
    w2 = jax.random.uniform(k3, (n_action, n_hidden), jnp.float32,
                            -bound2, bound2) * gain_tanh
    b2 = jax.random.uniform(k4, (n_action,), jnp.float32, -bound2, bound2)
    return w1, b1, w2, b2


def prepare_actor_params(w1, b1, w2, b2):
    """One-time prep: transpose + build lane-packed block-diagonal weight copies."""
    n_hidden, n_state = w1.shape
    n_action = w2.shape[0]
    pack = 128 // n_state if (0 < n_state <= 128 and 128 % n_state == 0) else 1

    def make(p):
        eye = jnp.eye(p, dtype=jnp.float32)
        return (jnp.kron(eye, w1.T),                  # [p*n_state,  p*n_hidden]
                jnp.tile(b1, p).reshape(1, -1),       # [1,          p*n_hidden]
                jnp.kron(eye, w2.T),                  # [p*n_hidden, p*n_action]
                jnp.tile(b2, p).reshape(1, -1))       # [1,          p*n_action]

    return {"n_state": n_state, "n_action": n_action, "pack": pack,
            "packed": make(pack),
            "plain": make(1) if pack > 1 else None}


def _block_diag(mats):
    rows = sum(m.shape[0] for m in mats)
    cols = sum(m.shape[1] for m in mats)
    out = jnp.zeros((rows, cols), mats[0].dtype)
    r = c = 0
    for m in mats:
        out = out.at[r:r + m.shape[0], c:c + m.shape[1]].set(m)
        r += m.shape[0]
        c += m.shape[1]
    return out


def fuse_actor_params(agent_params):
    """agent_params: list of (w1, b1, w2, b2) in PyTorch layout.  Builds one
    agent-block-diagonal weight set so A actors run in a single pallas_call."""
    W1 = _block_diag([w1.T for (w1, _, _, _) in agent_params])
    B1 = jnp.concatenate([b1 for (_, b1, _, _) in agent_params]).reshape(1, -1)
    W2 = _block_diag([w2.T for (_, _, w2, _) in agent_params])
    B2 = jnp.concatenate([b2 for (_, _, _, b2) in agent_params]).reshape(1, -1)
    return {"w1": W1, "b1": B1, "w2": W2, "b2": B2,
            "n_actions": [w2.shape[0] for (_, _, w2, _) in agent_params]}


# ------------------------------- wrappers -----------------------------------

def actor_forward(x, params, *, batch_tile=1024):
    """Single-agent forward.  x: [B, n_state] -> policy [B, n_action] (f32)."""
    B, n_state = x.shape
    n_action = params["n_action"]
    p = params["pack"]
    if p > 1 and B % p == 0:
        w1, b1, w2, b2 = params["packed"]
        xp = x.reshape(B // p, p * n_state)            # free, contiguous
        out = _actor_pallas(xp, w1, b1, w2, b2, batch_tile=batch_tile)
        return out.reshape(B, n_action)                # free, contiguous
    # Ragged batch (B % pack != 0): fall back to the un-packed weight set.
    w1, b1, w2, b2 = params["plain"] if params["plain"] is not None else params["packed"]
    return _actor_pallas(x, w1, b1, w2, b2, batch_tile=batch_tile)


def actors_forward_fused(xs, fused, *, batch_tile=1024):
    """Fused forward for A independent actors in ONE pallas_call.
    xs: list of per-agent observations [B, n_state_a].
    Returns list of per-agent policies [B, n_action_a]."""
    x_cat = jnp.concatenate(xs, axis=1)                # [B, sum(n_state_a)]
    out = _actor_pallas(x_cat, fused["w1"], fused["b1"], fused["w2"], fused["b2"],
                        batch_tile=batch_tile)
    outs, off = [], 0
    for na in fused["n_actions"]:
        outs.append(out[:, off:off + na])
        off += na
    return outs


# ------------------------------- reference ----------------------------------

def ref_forward(x, w1, b1, w2, b2):
    h = x @ w1.T + b1
    h = jnp.where(h > 0, h, 0.01 * h)
    return jnp.tanh(h @ w2.T + b2)


if __name__ == "__main__":
    key = jax.random.PRNGKey(0)
    n_state, n_hidden, n_action = 32, 32, 8

    kw, kx1, kx2, kx3, key = jax.random.split(key, 5)
    w1, b1, w2, b2 = init_params(kw, n_state, n_action, n_hidden)
    params = prepare_actor_params(w1, b1, w2, b2)

    # Case 1: small batch -> lane-packed [2, 128] input, single grid-less call.
    B1 = 8
    x1 = jax.random.normal(kx1, (B1, n_state), jnp.float32)
    out1 = jax.block_until_ready(actor_forward(x1, params))
    ref1 = ref_forward(x1, w1, b1, w2, b2)
    assert out1.shape == (B1, n_action)
    assert float(jnp.max(jnp.abs(out1 - ref1))) < 1e-5

    # Case 2: larger batch with a small tile -> batch grid with a ragged
    # (masked) edge block and no wrapper-side padding copy.
    B2 = 200
    x2 = jax.random.normal(kx2, (B2, n_state), jnp.float32)
    out2 = jax.block_until_ready(actor_forward(x2, params, batch_tile=16))
    ref2 = ref_forward(x2, w1, b1, w2, b2)
    assert out2.shape == (B2, n_action)
    assert float(jnp.max(jnp.abs(out2 - ref2))) < 1e-5

    # Case 3: batch not divisible by the pack factor -> plain (unpacked) path.
    B3 = 7
    x3 = jax.random.normal(kx3, (B3, n_state), jnp.float32)
    out3 = jax.block_until_ready(actor_forward(x3, params))
    ref3 = ref_forward(x3, w1, b1, w2, b2)
    assert out3.shape == (B3, n_action)
    assert float(jnp.max(jnp.abs(out3 - ref3))) < 1e-5

    # Case 4: A independent actors fused into ONE grid-less pallas_call.
    A, B4 = 3, 8
    agent_params, xs = [], []
    for _ in range(A):
        kp, kxa, key = jax.random.split(key, 3)
        agent_params.append(init_params(kp, n_state, n_action, n_hidden))
        xs.append(jax.random.normal(kxa, (B4, n_state), jnp.float32))
    fused = fuse_actor_params(agent_params)
    outs = [jax.block_until_ready(o) for o in actors_forward_fused(xs, fused)]
    for a in range(A):
        wa1, ba1, wa2, ba2 = agent_params[a]
        refa = ref_forward(xs[a], wa1, ba1, wa2, ba2)
        assert outs[a].shape == (B4, n_action)
        assert float(jnp.max(jnp.abs(outs[a] - refa))) < 1e-5

    print("KERNEL_OK")
</pallas_src>

<mosaic_0001>
module attributes {stable_mosaic.version = 11 : i64} {
  func.func @actor_kernel(%arg0: memref<2x128xf32, #tpu.memory_space<vmem>>, %arg1: memref<128x128xf32, #tpu.memory_space<vmem>>, %arg2: memref<1x128xf32, #tpu.memory_space<vmem>>, %arg3: memref<128x32xf32, #tpu.memory_space<vmem>>, %arg4: memref<1x32xf32, #tpu.memory_space<vmem>>, %arg5: memref<2x32xf32, #tpu.memory_space<vmem>>) attributes {dimension_semantics = [], scalar_prefetch = 0 : i64, scratch_operands = 0 : i64, tpu.core_type = #tpu.core_type<tc>} {
    %c0 = arith.constant 0 : index
    %c0_0 = arith.constant 0 : index
    %0 = vector.load %arg0[%c0, %c0_0] : memref<2x128xf32, #tpu.memory_space<vmem>>, vector<2x128xf32>
    %c0_1 = arith.constant 0 : index
    %c0_2 = arith.constant 0 : index
    %1 = vector.load %arg1[%c0_1, %c0_2] : memref<128x128xf32, #tpu.memory_space<vmem>>, vector<128x128xf32>
    %cst = arith.constant dense<0.000000e+00> : vector<2x128xf32>
    %2 = tpu.matmul %0, %1, %cst {dimension_numbers = #tpu.dot_dimension_numbers<[1], [0], [0], [1], [0, 0, 1, 1], [], []>} : vector<2x128xf32>, vector<128x128xf32>, vector<2x128xf32> -> vector<2x128xf32>
    %c0_3 = arith.constant 0 : index
    %c0_4 = arith.constant 0 : index
    %3 = vector.load %arg2[%c0_3, %c0_4] : memref<1x128xf32, #tpu.memory_space<vmem>>, vector<1x128xf32>
    %4 = vector.broadcast %3 : vector<1x128xf32> to vector<2x128xf32>
    %5 = arith.addf %2, %4 : vector<2x128xf32>
    %cst_5 = arith.constant 0.000000e+00 : f32
    %6 = vector.broadcast %cst_5 : f32 to vector<2x128xf32>
    %7 = arith.cmpf ogt, %5, %6 : vector<2x128xf32>
    %cst_6 = arith.constant 0.00999999977 : f32
    %8 = vector.broadcast %cst_6 : f32 to vector<2x128xf32>
    %9 = arith.mulf %8, %5 : vector<2x128xf32>
    %10 = arith.select %7, %5, %9 : vector<2x128xi1>, vector<2x128xf32>
    %c0_7 = arith.constant 0 : index
    %c0_8 = arith.constant 0 : index
    %11 = vector.load %arg3[%c0_7, %c0_8] : memref<128x32xf32, #tpu.memory_space<vmem>>, vector<128x32xf32>
    %cst_9 = arith.constant dense<0.000000e+00> : vector<2x32xf32>
    %12 = tpu.matmul %10, %11, %cst_9 {dimension_numbers = #tpu.dot_dimension_numbers<[1], [0], [0], [1], [0, 0, 1, 1], [], []>} : vector<2x128xf32>, vector<128x32xf32>, vector<2x32xf32> -> vector<2x32xf32>
    %c0_10 = arith.constant 0 : index
    %c0_11 = arith.constant 0 : index
    %13 = vector.load %arg4[%c0_10, %c0_11] : memref<1x32xf32, #tpu.memory_space<vmem>>, vector<1x32xf32>
    %14 = vector.broadcast %13 : vector<1x32xf32> to vector<2x32xf32>
    %15 = arith.addf %12, %14 : vector<2x32xf32>
    %16 = math.tanh %15 : vector<2x32xf32>
    %c0_12 = arith.constant 0 : index
    %c0_13 = arith.constant 0 : index
    %17 = vector.load %arg5[%c0_12, %c0_13] : memref<2x32xf32, #tpu.memory_space<vmem>>, vector<2x32xf32>
    tpu.vector_store %arg5[%c0_12, %c0_13], %16 {strides = array<i32>} : memref<2x32xf32, #tpu.memory_space<vmem>>, vector<2x32xf32>,
    return
  }
}

</mosaic_0001>

<bundles_post_ra>
// kernel: tpu_custom_call.1
= control target key start
LH: loop header
LB: loop body
LE: loop exit
PB: predicated region body
PF: predicated region fallthrough
CT: control target
= control target key end

     0   :  { %v412_v3 = vmov 0.0|0.0   ;;  %vm413_vm0 = vmmov 0   ;;  %v414_v6 = vmov 0.0   ;;  %s579_s0 = inlined_call_operand.vmem [shape: f32[2,128], index: 0, kind: input, shape index: {}]   ;;  %s580_s1 = inlined_call_operand.vmem [shape: f32[128,128], index: 1, kind: input, shape index: {}]   ;;  %s581_s2 = inlined_call_operand.vmem [shape: f32[1,128], index: 2, kind: input, shape index: {}]   ;;  %s582_s3 = inlined_call_operand.vmem [shape: f32[128,32], index: 3, kind: input, shape index: {}]   ;;  %s583_s4 = inlined_call_operand.vmem [shape: f32[1,32], index: 4, kind: input, shape index: {}]   ;;  %s584_s5 = inlined_call_operand.hbm [shape: f32[2,32], index: 5, kind: output, shape index: {}]  }
   0x1   :  { %v22_v0 = vld [vmem:[%s580_s1] sm:$0xff]  ;;  %v23_v1 = vld [vmem:[%s580_s1 + $0x8] sm:$0xff]  ;;  %v24_v2 = vld [vmem:[%s580_s1 + $0x10] sm:$0xff]  ;;  %334 = vmatprep.subr.bf16.mxu0 %v412_v3  ;;  %296 = vmatprep.mubr.msk.f32.mxu0 %vm413_vm0, %v414_v6 }
   0x2   :  { %v335_v4 = vpack.c.bf16 %v23_v1, %v22_v0  ;;  %v25_v5 = vld [vmem:[%s580_s1 + $0x18] sm:$0xff]  ;;  %358 = vmatprep.subr.bf16.mxu1 %v412_v3  ;;  %331 = vmatprep.mubr.msk.f32.mxu1 %vm413_vm0, %v414_v6  ;;  %v26_v8 = vld [vmem:[%s580_s1 + $0x20] sm:$0xff]  ;;  %v27_v9 = vld [vmem:[%s580_s1 + $0x28] sm:$0xff] }
   0x3   :  { %v338_v7 = vpack.c.bf16 %v25_v5, %v24_v2  ;;  %v118_v10 = vld [vmem:[%s582_s3] sm:$0xff]  ;;  %v119_v11 = vld [vmem:[%s582_s3 + $0x8] sm:$0xff]  ;;  %v120_v12 = vld [vmem:[%s582_s3 + $0x10] sm:$0xff]  ;;  %v341_v14 = vpack.c.bf16 %v27_v9, %v26_v8 }
   0x4   :  { %336 = vmatpush3.bf16.msra.mxu0 %v335_v4  ;;  %v121_v13 = vld [vmem:[%s582_s3 + $0x18] sm:$0xff]  ;;  %v359_v15 = vpack.c.bf16 %v119_v11, %v118_v10  ;;  %v28_v16 = vld [vmem:[%s580_s1 + $0x30] sm:$0xff]  ;;  %v122_v19 = vld [vmem:[%s582_s3 + $0x20] sm:$0xff] }
   0x5   :  { %337 = vmatprep.subr.bf16.mxu0 %v412_v3  ;;  %v29_v17 = vld [vmem:[%s580_s1 + $0x38] sm:$0xff]  ;;  %v362_v18 = vpack.c.bf16 %v121_v13, %v120_v12  ;;  %v123_v20 = vld [vmem:[%s582_s3 + $0x28] sm:$0xff] }
   0x6   :  { %360 = vmatpush3.bf16.msra.mxu1 %v359_v15 }
   0x7   :  { %361 = vmatprep.subr.bf16.mxu1 %v412_v3 }
   0x8   :  { %339 = vmatpush3.bf16.msra.mxu0 %v338_v7 }
   0x9   :  { %340 = vmatprep.subr.bf16.mxu0 %v412_v3 }
   0xa   :  { %10 = vsyncpa [#allocation3], 0  ;;  %v344_v21 = vpack.c.bf16 %v29_v17, %v28_v16  ;;  %v30_v22 = vld [vmem:[%s580_s1 + $0x40] sm:$0xff]  ;;  %v31_v23 = vld [vmem:[%s580_s1 + $0x48] sm:$0xff]  ;;  %363 = vmatpush3.bf16.msra.mxu1 %v362_v18  ;;  %v365_v24 = vpack.c.bf16 %v123_v20, %v122_v19  ;;  %vm212_vm2 = vcmask 254976  }
   0xb   :  { %364 = vmatprep.subr.bf16.mxu1 %v412_v3  ;;  %v124_v25 = vld [vmem:[%s582_s3 + $0x30] sm:$0xff]  ;;  %v125_v26 = vld [vmem:[%s582_s3 + $0x38] sm:$0xff]  ;;  %v347_v27 = vpack.c.bf16 %v31_v23, %v30_v22  ;;  %v126_v31 = vld [vmem:[%s582_s3 + $0x40] sm:$0xff] }
   0xc   :  { %342 = vmatpush3.bf16.msra.mxu0 %v341_v14  ;;  %v32_v28 = vld [vmem:[%s580_s1 + $0x50] sm:$0xff]  ;;  %v33_v29 = vld [vmem:[%s580_s1 + $0x58] sm:$0xff]  ;;  %v368_v30 = vpack.c.bf16 %v125_v26, %v124_v25  ;;  %v127_v32 = vld [vmem:[%s582_s3 + $0x48] sm:$0xff] }
   0xd   :  { %343 = vmatprep.subr.bf16.mxu0 %v412_v3  ;;  %v350_v33 = vpack.c.bf16 %v33_v29, %v32_v28  ;;  %v34_v34 = vld [vmem:[%s580_s1 + $0x60] sm:$0xff]  ;;  %v35_v35 = vld [vmem:[%s580_s1 + $0x68] sm:$0xff]  ;;  %v371_v36 = vpack.c.bf16 %v127_v32, %v126_v31  ;;  %v128_v37 = vld [vmem:[%s582_s3 + $0x50] sm:$0xff] }
   0xe   :  { %366 = vmatpush3.bf16.msra.mxu1 %v365_v24  ;;  %v129_v38 = vld [vmem:[%s582_s3 + $0x58] sm:$0xff]  ;;  %v353_v39 = vpack.c.bf16 %v35_v35, %v34_v34  ;;  %v36_v40 = vld [vmem:[%s580_s1 + $0x70] sm:$0xff]  ;;  %v130_v43 = vld [vmem:[%s582_s3 + $0x60] sm:$0xff] }
   0xf   :  { %367 = vmatprep.subr.bf16.mxu1 %v412_v3  ;;  %v37_v41 = vld [vmem:[%s580_s1 + $0x78] sm:$0xff]  ;;  %v374_v42 = vpack.c.bf16 %v129_v38, %v128_v37  ;;  %v131_v44 = vld [vmem:[%s582_s3 + $0x68] sm:$0xff]  ;;  %v21_v47 = vld [vmem:[%s579_s0] sm:$0x3] }
  0x10   :  { %345 = vmatpush3.bf16.msra.mxu0 %v344_v21  ;;  %v356_v45 = vpack.c.bf16 %v37_v41, %v36_v40  ;;  %v377_v46 = vpack.c.bf16 %v131_v44, %v130_v43  ;;  %v132_v48 = vld [vmem:[%s582_s3 + $0x70] sm:$0xff]  ;;  %v133_v49 = vld [vmem:[%s582_s3 + $0x78] sm:$0xff]  ;;  %v228_v51 = vld [vmem:[%s581_s2] ss:$0 sm:$0xff]  ;;  %s415_s3 = smov [#allocation2]  }
  0x11   :  { %346 = vmatprep.subr.bf16.mxu0 %v412_v3  ;;  %v380_v50 = vpack.c.bf16 %v133_v49, %v132_v48  ;;  %v229_v57 = vld [vmem:[%s583_s4] ss:$0 sm:$0xff]  ;;  %s220_s11 = sshll.u32 %s415_s3, 4  ;;  %s221_s11 = int_to_ptr.vmem [resolvable:$true] %s220_s11 }
  0x12   :  { %369 = vmatpush3.bf16.msra.mxu1 %v368_v30  ;;  %s388_s2 = scalar_lea.vmem %s221_s11, 32  ;;  %p393_p1 = scmp.lt.s32.totalorder %s221_s11, %s221_s11 }
  0x13   :  { %370 = vmatprep.subr.bf16.mxu1 %v412_v3  ;;  %p389_p0 = scmp.ne.s32.totalorder %s221_s11, %s388_s2  ;;  %p394_p2 = scmp.lt.s32.totalorder %s388_s2, %s388_s2 }
  0x14   :  { %348 = vmatpush3.bf16.msra.mxu0 %v347_v27 }
  0x15   :  { %349 = vmatprep.subr.bf16.mxu0 %v412_v3  ;;  %p395_p3 = por %p394_p2, %p393_p1 }
  0x16   :  { %372 = vmatpush3.bf16.msra.mxu1 %v371_v36 }
  0x17   :  { %373 = vmatprep.subr.bf16.mxu1 %v412_v3  ;;  %p396_p4 = pnand %p395_p3, %p389_p0 }
  0x18   :  { %351 = vmatpush3.bf16.msra.mxu0 %v350_v33 }
  0x19   :  { %352 = vmatprep.subr.bf16.mxu0 %v412_v3 }
  0x1a   :  { %375 = vmatpush3.bf16.msra.mxu1 %v374_v42 }
  0x1b   :  { %376 = vmatprep.subr.bf16.mxu1 %v412_v3 }
  0x1c   :  { %354 = vmatpush3.bf16.msra.mxu0 %v353_v39 }
  0x1d   :  { %355 = vmatprep.subr.bf16.mxu0 %v412_v3 }
  0x1e   :  { %378 = vmatpush3.bf16.msra.mxu1 %v377_v46 }
  0x1f   :  { %379 = vmatprep.subr.bf16.mxu1 %v412_v3 }
  0x20   :  { %357 = vmatpush3.bf16.msra.mxu0 %v356_v45 }
  0x22   :  { %381 = vmatpush3.bf16.msra.mxu1 %v380_v50 }
  0x23   :  { %297 = vmatmul.mubr.f32.vlgmr.msra.gmra.mrb[0].mxu0 %v21_v47 }
  0xf6   :  { %v111_v52 = vpop.f32.mrb[0].mxu0 }
  0xf7   :  { %v112_v53 = vadd.f32 %v228_v51, %v111_v52  ;;  %v298_v54 = vpop.f32.mrb[1].mxu0 }
  0xf9   :  { %v116_v55 = vmul.f32 0.01, %v112_v53  ;;  %vm115_vm1 = vcmp.gt.f32.partialorder %v112_v53, 0.0 }
  0xfb   :  { %v117_v56 = vsel %vm115_vm1, %v112_v53, %v116_v55 }
  0xfc   :  { %332 = vmatmul.mubr.f32.vlgmr.msra.gmra.mrb[0].mxu1 %v117_v56 }
 0x1cf   :  { %v207_v58 = vpop.f32.mrb[0].mxu1 }
 0x1d0   :  { %v208_v59 = vadd.f32 %v229_v57, %v207_v58  ;;  %v333_v60 = vpop.f32.mrb[1].mxu1 }
 0x1d2   :  { %386 = vtanh.f32 %v208_v59 }
 0x1dc   :  { %v387_v61 = vpop.eup %386 }
 0x1dd   :  { %213 = vst.msk [vmem:[#allocation2] sm:$0x3] %vm212_vm2, %v387_v61 }
 0x1de   :  { %399 = shalt.err (!%p396_p4)
}
 0x1df   :  { %s400_s4 = scalar_lea.hbm %s584_s5, 32 }
 0x1e0   :  { %p401_p5 = scmp.ne.s32.totalorder %s584_s5, %s400_s4  ;;  %p404_p6 = scmp.lt.u32.totalorder %s400_s4, %s584_s5 }
 0x1e2   :  { %p406_p7 = pnand %p404_p6, %p401_p5 }
 0x1e4   :  { %409 = shalt.err (!%p406_p7)
}
 0x1e5   :  { %223 = dma.vmem_to_hbm [thread:$0]  %s221_s11, 32, %s584_s5, [#allocation3]  }
 0x1e6   :  { %410 = dma.done.wait [#allocation3], 32  }
 0x1e7   :  { %411 = vsyncadd [#allocation3], 4294967264 }
 0x1e8   :  { %227 = vsyncpa [#allocation3], 1 }

</bundles_post_ra>
